<compile_context>
chip_gen: v5e
topology: v5e:2x2
jax: 0.10.0
libtpu: 0.0.40
codegen_flags: <defaults>
</compile_context>

<pallas_src>
import jax
import jax.numpy as jnp
import numpy as np
from jax import lax
from jax.experimental import pallas as pl
from jax.experimental.pallas import tpu as pltpu


# ----------------------------------------------------------------------------
# DDPM schedules (plain JAX glue, identical math to the PyTorch version)
# ----------------------------------------------------------------------------
def ddpm_schedules(beta1, beta2, T):
    assert beta1 < beta2 < 1.0, "beta1 and beta2 must be in (0, 1)"
    beta_t = (beta2 - beta1) * jnp.arange(0, T + 1, dtype=jnp.float32) / T + beta1
    sqrt_beta_t = jnp.sqrt(beta_t)
    alpha_t = 1.0 - beta_t
    log_alpha_t = jnp.log(alpha_t)
    alphabar_t = jnp.exp(jnp.cumsum(log_alpha_t))
    sqrtab = jnp.sqrt(alphabar_t)
    oneover_sqrta = 1.0 / jnp.sqrt(alpha_t)
    sqrtmab = jnp.sqrt(1.0 - alphabar_t)
    mab_over_sqrtmab_inv = (1.0 - alpha_t) / sqrtmab
    return {
        "alpha_t": alpha_t,
        "oneover_sqrta": oneover_sqrta,
        "sqrt_beta_t": sqrt_beta_t,
        "alphabar_t": alphabar_t,
        "sqrtab": sqrtab,
        "sqrtmab": sqrtmab,
        "mab_over_sqrtmab": mab_over_sqrtmab_inv,
    }


# ----------------------------------------------------------------------------
# Fused Pallas kernel
#   per grid step: BB images, layout (BB, C, HW) with HW lane-dense.
#   x_t mix  ->  pixel-MLP eps prediction  ->  per-lane squared-error partial
#   sums written once to this block's lane-dense output row.
# ----------------------------------------------------------------------------
def ddpm_loss_kernel(sa_ref, sm_ref, v_ref,       # (BB,1,1) per-image scalars
                     x_ref, n_ref,                # (BB,C,HW) data streams
                     film_ref,                    # (BB,2*HID,1) [1+scale ; shift]
                     w1b_ref,                     # (C,HID,HW) w1 pre-broadcast
                     b1b_ref,                     # (HID,HW)
                     w2b_ref,                     # (C,HID,HW) w2 cols pre-broadcast
                     b2b_ref,                     # (C,HW)
                     out_ref):                    # (1,1,HW) partial sums
    BB, C, HW = x_ref.shape
    HID = b1b_ref.shape[0]

    # Hoisted out of the per-image loop (stay vreg-resident): the biases.
    # The large pre-broadcast weight tiles stay in VMEM and are re-read per
    # channel inside the loop -- vld slots have slack while the VALU is the
    # binding slot, and pinning them would need 64+ vregs (spills).
    b1b = b1b_ref[...]                             # (HID, HW)
    b2b = b2b_ref[...]                             # (C, HW)

    def per_image(i, acc):
        x_b = x_ref[i]                             # (C, HW)
        n_b = n_ref[i]                             # (C, HW)
        # x_t = sqrtab * x + sqrtmab * noise (VPU, (1,1) splat broadcast)
        x_t = sa_ref[i] * x_b + sm_ref[i] * n_b

        # ---- layer 1: K = C = 4 contraction as unrolled broadcast-FMAs.
        # Weight tiles come straight from VMEM (no in-loop weight broadcast);
        # only the x_t row needs a sublane broadcast per channel.
        h = b1b
        for c in range(C):
            h = h + w1b_ref[c] * x_t[c:c + 1, :]   # (HID,HW)
        h = jnp.maximum(h, 0.0)

        # ---- FiLM: scale' = 1+scale was folded in the wrapper.
        film_b = film_ref[i]                       # (2*HID, 1)
        h = h * film_b[:HID, :] + film_b[HID:, :]

        # ---- layer 2: per output channel, one full-width multiply by the
        # pre-broadcast w2 column + sublane (XLU) reduce, fused into the
        # squared error.  Replaces 32 sublane broadcasts + half-padded FMAs.
        img = jnp.zeros((1, HW), jnp.float32)
        for c in range(C):
            eps_c = jnp.sum(h * w2b_ref[c], axis=0, keepdims=True) \
                    + b2b[c:c + 1, :]              # (1, HW)
            d = n_b[c:c + 1, :] - eps_c
            img = img + d * d
        # validity weight zeroes padded tail images
        return acc + v_ref[i] * img

    unroll = True if BB <= 8 else 2                # cross-image ILP for the LLO
    acc = lax.fori_loop(0, BB, per_image,
                        jnp.zeros((1, HW), jnp.float32), unroll=unroll)
    out_ref[...] = acc.reshape(out_ref.shape)      # single lane-dense store


def _pick_batch_block(B, C, HW, itemsize=4, target_bytes=256 << 10, min_steps=4):
    """Images per grid step.  Amortizes the ~0.35us/step pipeline overhead
    while (a) keeping x+noise per step <= ~256 KiB (VMEM never binding) and
    (b) keeping >= min_steps grid steps so v7x's two TensorCores both get work
    via the "parallel" grid axis.  B is padded up to G*BB by the caller."""
    per_img = 2 * C * HW * itemsize
    bb = max(1, min(B, target_bytes // per_img))
    bb = min(bb, max(1, B // min_steps))
    g = -(-B // bb)
    return int(bb), int(g)


def _pad_batch(a, Bp):
    pad = Bp - a.shape[0]
    if pad == 0:
        return a
    return jnp.pad(a, ((0, pad),) + ((0, 0),) * (a.ndim - 1))


def student_ddpm_loss(x_nchw, c, key, params, sched, n_T, drop_prob):
    """Forward pass of Student_DDPM (training loss). x_nchw: (B, C, H, W) f32."""
    B, C, H, W = x_nchw.shape
    HW = H * W
    HID = params["w1"].shape[1]
    n_classes = params["w_cond"].shape[0] - 1

    k_ts, k_noise, k_mask = jax.random.split(key, 3)

    # ---- random draws (host-side glue, mirrors torch.randint/randn/bernoulli)
    _ts = jax.random.randint(k_ts, (B,), 1, n_T + 1)                 # [1, n_T]
    noise_nchw = jax.random.normal(k_noise, x_nchw.shape, jnp.float32)
    context_mask = jax.random.bernoulli(k_mask, drop_prob, (B,)).astype(jnp.float32)

    sa = sched["sqrtab"][_ts].astype(jnp.float32)    # (B,)
    sm = sched["sqrtmab"][_ts].astype(jnp.float32)   # (B,)

    # ---- conditioning (tiny (B, n_classes+1) matmul: plain-JAX glue)
    ctx = jax.nn.one_hot(c, n_classes, dtype=jnp.float32) * (1.0 - context_mask)[:, None]
    t_norm = (_ts.astype(jnp.float32) / n_T)[:, None]
    cond = jnp.concatenate([ctx, t_norm], axis=1)                    # (B, n_classes+1)
    film = cond @ params["w_cond"] + params["b_cond"]                # (B, 2*HID)
    scale = film[:, :HID]
    shift = film[:, HID:]
    # fold (1 + scale) and pack scale'/shift into ONE small VMEM stream
    film_packed = jnp.concatenate([1.0 + scale, shift], axis=1)[:, :, None]  # (B,2*HID,1)

    # ---- channels-on-sublanes / pixels-on-lanes layout: NCHW -> (B, C, HW)
    # is a pure reshape (no transpose), HW pixel axis lane-dense.
    x_px = x_nchw.reshape(B, C, HW)
    n_px = noise_nchw.reshape(B, C, HW)
    sa3 = sa.reshape(B, 1, 1)
    sm3 = sm.reshape(B, 1, 1)

    # ---- weights pre-broadcast along the lane-dense pixel axis (one-off
    # parameter layout plumbing, ~300 KiB total): in-kernel weight use becomes
    # a pure VMEM load with zero per-image broadcast ops.
    w1b = jnp.broadcast_to(params["w1"][:, :, None], (C, HID, HW)).astype(jnp.float32)
    b1b = jnp.broadcast_to(params["b1"][:, None], (HID, HW)).astype(jnp.float32)
    w2b = jnp.broadcast_to(params["w2"].T[:, :, None], (C, HID, HW)).astype(jnp.float32)
    b2b = jnp.broadcast_to(params["b2"][:, None], (C, HW)).astype(jnp.float32)

    # ---- batch blocking: pad B up to G*BB and mask the tail with `valid`
    BB, G = _pick_batch_block(B, C, HW)
    Bp = BB * G
    valid = (jnp.arange(Bp) < B).astype(jnp.float32).reshape(Bp, 1, 1)
    sa3p = _pad_batch(sa3, Bp)
    sm3p = _pad_batch(sm3, Bp)
    x_pxp = _pad_batch(x_px, Bp)
    n_pxp = _pad_batch(n_px, Bp)
    filmp = _pad_batch(film_packed, Bp)

    grid_spec = pltpu.PrefetchScalarGridSpec(
        num_scalar_prefetch=0,
        grid=(G,),
        in_specs=[
            pl.BlockSpec((BB, 1, 1), lambda g: (g, 0, 0)),          # sqrtab[_ts]
            pl.BlockSpec((BB, 1, 1), lambda g: (g, 0, 0)),          # sqrtmab[_ts]
            pl.BlockSpec((BB, 1, 1), lambda g: (g, 0, 0)),          # validity
            pl.BlockSpec((BB, C, HW), lambda g: (g, 0, 0)),         # x
            pl.BlockSpec((BB, C, HW), lambda g: (g, 0, 0)),         # noise
            pl.BlockSpec((BB, 2 * HID, 1), lambda g: (g, 0, 0)),    # FiLM scale'/shift
            pl.BlockSpec((C, HID, HW), lambda g: (0, 0, 0)),        # w1 (broadcast)
            pl.BlockSpec((HID, HW), lambda g: (0, 0)),              # b1 (broadcast)
            pl.BlockSpec((C, HID, HW), lambda g: (0, 0, 0)),        # w2 cols (broadcast)
            pl.BlockSpec((C, HW), lambda g: (0, 0)),                # b2 (broadcast)
        ],
        # per-block partial sums (one lane-dense row per block, written once)
        out_specs=pl.BlockSpec((1, 1, HW), lambda g: (g, 0, 0)),
    )

    sq_partials = pl.pallas_call(
        ddpm_loss_kernel,
        out_shape=jax.ShapeDtypeStruct((G, 1, HW), jnp.float32),
        grid_spec=grid_spec,
        compiler_params=pltpu.CompilerParams(dimension_semantics=("parallel",)),
    )(sa3p, sm3p, valid, x_pxp, n_pxp, filmp, w1b, b1b, w2b, b2b)

    loss = jnp.sum(sq_partials) / (B * C * H * W)

    # what the reference needs for verification (unpadded)
    aux = dict(_ts=_ts, noise=noise_nchw, mask=context_mask,
               scale=scale[:, :, None], shift=shift[:, :, None],
               sa=sa3, sm=sm3, x_px=x_px, n_px=n_px)
    return loss, aux


# ----------------------------------------------------------------------------
# Pure-JAX reference (same math, no Pallas) for a correctness check
# ----------------------------------------------------------------------------
def reference_loss(aux, params):
    hp = jax.lax.Precision.HIGHEST
    x_t = aux["sa"] * aux["x_px"] + aux["sm"] * aux["n_px"]          # (B, C, HW)
    h = jnp.einsum("bcp,ch->bhp", x_t, params["w1"], precision=hp)
    h = h + params["b1"][None, :, None]
    h = jnp.maximum(h, 0.0)
    h = h * (1.0 + aux["scale"]) + aux["shift"]
    eps = jnp.einsum("bhp,hc->bcp", h, params["w2"], precision=hp)
    eps = eps + params["b2"][None, :, None]
    return jnp.mean((aux["n_px"] - eps) ** 2)


# ----------------------------------------------------------------------------
# Parameter init (deterministic, in-script)
# ----------------------------------------------------------------------------
def init_params(key, C, HID, n_classes):
    ks = jax.random.split(key, 6)
    s = 0.1
    return {
        "w1": s * jax.random.normal(ks[0], (C, HID), jnp.float32),
        "b1": s * jax.random.normal(ks[1], (HID,), jnp.float32),
        "w2": s * jax.random.normal(ks[2], (HID, C), jnp.float32),
        "b2": s * jax.random.normal(ks[3], (C,), jnp.float32),
        "w_cond": s * jax.random.normal(ks[4], (n_classes + 1, 2 * HID), jnp.float32),
        "b_cond": s * jax.random.normal(ks[5], (2 * HID,), jnp.float32),
    }


if __name__ == "__main__":
    C, H, W = 4, 16, 16
    HID, N_CLASSES = 32, 10
    N_T = 100
    DROP_PROB = 0.1

    root = jax.random.PRNGKey(0)
    k_param, k_rest = jax.random.split(root)
    params = init_params(k_param, C, HID, N_CLASSES)
    sched = ddpm_schedules(1e-4, 0.02, N_T)

    def run_case(B, seed):
        kk = jax.random.PRNGKey(seed)
        k_x, k_c, k_fwd = jax.random.split(kk, 3)
        x = jax.random.normal(k_x, (B, C, H, W), jnp.float32)       # NCHW, like PyTorch
        c = jax.random.randint(k_c, (B,), 0, N_CLASSES)             # class labels
        loss, aux = student_ddpm_loss(x, c, k_fwd, params, sched, N_T, DROP_PROB)
        loss = jax.block_until_ready(loss)
        ref = jax.block_until_ready(reference_loss(aux, params))
        np.testing.assert_allclose(np.asarray(loss), np.asarray(ref),
                                   rtol=2e-5, atol=2e-5)

    # small case (matches the spec's implied shapes)
    run_case(B=2, seed=1)
    # larger, non-divisible batch: exercises multi-step grid, partial unroll,
    # padding + validity masking, and the megacore-parallel grid axis
    run_case(B=37, seed=2)

    print("KERNEL_OK")
</pallas_src>

<mosaic_0001>
module attributes {stable_mosaic.version = 11 : i64} {
  func.func @ddpm_loss_kernel(%arg0: i32, %arg1: memref<1x1x1xf32, #tpu.memory_space<vmem>>, %arg2: memref<1x1x1xf32, #tpu.memory_space<vmem>>, %arg3: memref<1x1x1xf32, #tpu.memory_space<vmem>>, %arg4: memref<1x4x256xf32, #tpu.memory_space<vmem>>, %arg5: memref<1x4x256xf32, #tpu.memory_space<vmem>>, %arg6: memref<1x64x1xf32, #tpu.memory_space<vmem>>, %arg7: memref<4x32x256xf32, #tpu.memory_space<vmem>>, %arg8: memref<32x256xf32, #tpu.memory_space<vmem>>, %arg9: memref<4x32x256xf32, #tpu.memory_space<vmem>>, %arg10: memref<4x256xf32, #tpu.memory_space<vmem>>, %arg11: memref<1x1x256xf32, #tpu.memory_space<vmem>>) attributes {dimension_semantics = [#tpu.dimension_semantics<parallel>], iteration_bounds = array<i64: 2>, scalar_prefetch = 0 : i64, scratch_operands = 0 : i64, tpu.core_type = #tpu.core_type<tc>, window_params = [{transform_indices = @transform_0, window_bounds = array<i64: 1, 1, 1>}, {transform_indices = @transform_1, window_bounds = array<i64: 1, 1, 1>}, {transform_indices = @transform_2, window_bounds = array<i64: 1, 1, 1>}, {transform_indices = @transform_3, window_bounds = array<i64: 1, 4, 256>}, {transform_indices = @transform_4, window_bounds = array<i64: 1, 4, 256>}, {transform_indices = @transform_5, window_bounds = array<i64: 1, 64, 1>}, {pipeline_mode = #tpu.pipeline_mode<synchronous>, transform_indices = @transform_6, window_bounds = array<i64: 4, 32, 256>}, {pipeline_mode = #tpu.pipeline_mode<synchronous>, transform_indices = @transform_7, window_bounds = array<i64: 32, 256>}, {pipeline_mode = #tpu.pipeline_mode<synchronous>, transform_indices = @transform_8, window_bounds = array<i64: 4, 32, 256>}, {pipeline_mode = #tpu.pipeline_mode<synchronous>, transform_indices = @transform_9, window_bounds = array<i64: 4, 256>}, {transform_indices = @transform_10, window_bounds = array<i64: 1, 1, 256>}]} {
    %c0 = arith.constant 0 : index
    %c0_0 = arith.constant 0 : index
    %0 = vector.load %arg8[%c0, %c0_0] : memref<32x256xf32, #tpu.memory_space<vmem>>, vector<32x256xf32>
    %c0_1 = arith.constant 0 : index
    %c0_2 = arith.constant 0 : index
    %1 = vector.load %arg10[%c0_1, %c0_2] : memref<4x256xf32, #tpu.memory_space<vmem>>, vector<4x256xf32>
    %cst = arith.constant 0.000000e+00 : f32
    %2 = vector.broadcast %cst : f32 to vector<1x256xf32>
    %c0_i32 = arith.constant 0 : i32
    %3 = arith.index_cast %c0_i32 : i32 to index
    %c0_3 = arith.constant 0 : index
    %c0_4 = arith.constant 0 : index
    %4 = vector.load %arg4[%3, %c0_3, %c0_4] : memref<1x4x256xf32, #tpu.memory_space<vmem>>, vector<1x4x256xf32>
    %5 = vector.shape_cast %4 : vector<1x4x256xf32> to vector<4x256xf32>
    %6 = arith.index_cast %c0_i32 : i32 to index
    %c0_5 = arith.constant 0 : index
    %c0_6 = arith.constant 0 : index
    %7 = vector.load %arg5[%6, %c0_5, %c0_6] : memref<1x4x256xf32, #tpu.memory_space<vmem>>, vector<1x4x256xf32>
    %8 = vector.shape_cast %7 : vector<1x4x256xf32> to vector<4x256xf32>
    %9 = arith.index_cast %c0_i32 : i32 to index
    %c0_7 = arith.constant 0 : index
    %c0_8 = arith.constant 0 : index
    %10 = vector.load %arg1[%9, %c0_7, %c0_8] : memref<1x1x1xf32, #tpu.memory_space<vmem>>, vector<1x1x1xf32>
    %11 = vector.shape_cast %10 : vector<1x1x1xf32> to vector<1x1xf32>
    %12 = vector.broadcast %11 : vector<1x1xf32> to vector<4x256xf32>
    %13 = arith.mulf %12, %5 : vector<4x256xf32>
    %14 = arith.index_cast %c0_i32 : i32 to index
    %c0_9 = arith.constant 0 : index
    %c0_10 = arith.constant 0 : index
    %15 = vector.load %arg2[%14, %c0_9, %c0_10] : memref<1x1x1xf32, #tpu.memory_space<vmem>>, vector<1x1x1xf32>
    %16 = vector.shape_cast %15 : vector<1x1x1xf32> to vector<1x1xf32>
    %17 = vector.broadcast %16 : vector<1x1xf32> to vector<4x256xf32>
    %18 = arith.mulf %17, %8 : vector<4x256xf32>
    %19 = arith.addf %13, %18 : vector<4x256xf32>
    %c0_11 = arith.constant 0 : index
    %c0_12 = arith.constant 0 : index
    %c0_13 = arith.constant 0 : index
    %20 = vector.load %arg7[%c0_11, %c0_12, %c0_13] : memref<4x32x256xf32, #tpu.memory_space<vmem>>, vector<1x32x256xf32>
    %21 = vector.shape_cast %20 : vector<1x32x256xf32> to vector<32x256xf32>
    %22 = vector.extract_strided_slice %19 {offsets = [0, 0], sizes = [1, 256], strides = [1, 1]} : vector<4x256xf32> to vector<1x256xf32>
    %23 = vector.broadcast %22 : vector<1x256xf32> to vector<32x256xf32>
    %24 = arith.mulf %21, %23 : vector<32x256xf32>
    %25 = arith.addf %0, %24 : vector<32x256xf32>
    %c1 = arith.constant 1 : index
    %c0_14 = arith.constant 0 : index
    %c0_15 = arith.constant 0 : index
    %26 = vector.load %arg7[%c1, %c0_14, %c0_15] : memref<4x32x256xf32, #tpu.memory_space<vmem>>, vector<1x32x256xf32>
    %27 = vector.shape_cast %26 : vector<1x32x256xf32> to vector<32x256xf32>
    %28 = vector.extract_strided_slice %19 {offsets = [1, 0], sizes = [1, 256], strides = [1, 1]} : vector<4x256xf32> to vector<1x256xf32>
    %29 = vector.broadcast %28 : vector<1x256xf32> to vector<32x256xf32>
    %30 = arith.mulf %27, %29 : vector<32x256xf32>
    %31 = arith.addf %25, %30 : vector<32x256xf32>
    %c2 = arith.constant 2 : index
    %c0_16 = arith.constant 0 : index
    %c0_17 = arith.constant 0 : index
    %32 = vector.load %arg7[%c2, %c0_16, %c0_17] : memref<4x32x256xf32, #tpu.memory_space<vmem>>, vector<1x32x256xf32>
    %33 = vector.shape_cast %32 : vector<1x32x256xf32> to vector<32x256xf32>
    %34 = vector.extract_strided_slice %19 {offsets = [2, 0], sizes = [1, 256], strides = [1, 1]} : vector<4x256xf32> to vector<1x256xf32>
    %35 = vector.broadcast %34 : vector<1x256xf32> to vector<32x256xf32>
    %36 = arith.mulf %33, %35 : vector<32x256xf32>
    %37 = arith.addf %31, %36 : vector<32x256xf32>
    %c3 = arith.constant 3 : index
    %c0_18 = arith.constant 0 : index
    %c0_19 = arith.constant 0 : index
    %38 = vector.load %arg7[%c3, %c0_18, %c0_19] : memref<4x32x256xf32, #tpu.memory_space<vmem>>, vector<1x32x256xf32>
    %39 = vector.shape_cast %38 : vector<1x32x256xf32> to vector<32x256xf32>
    %40 = vector.extract_strided_slice %19 {offsets = [3, 0], sizes = [1, 256], strides = [1, 1]} : vector<4x256xf32> to vector<1x256xf32>
    %41 = vector.broadcast %40 : vector<1x256xf32> to vector<32x256xf32>
    %42 = arith.mulf %39, %41 : vector<32x256xf32>
    %43 = arith.addf %37, %42 : vector<32x256xf32>
    %cst_20 = arith.constant 0.000000e+00 : f32
    %44 = vector.broadcast %cst_20 : f32 to vector<32x256xf32>
    %45 = arith.maximumf %43, %44 : vector<32x256xf32>
    %46 = arith.index_cast %c0_i32 : i32 to index
    %c0_21 = arith.constant 0 : index
    %c0_22 = arith.constant 0 : index
    %47 = vector.load %arg6[%46, %c0_21, %c0_22] : memref<1x64x1xf32, #tpu.memory_space<vmem>>, vector<1x64x1xf32>
    %48 = vector.shape_cast %47 : vector<1x64x1xf32> to vector<64x1xf32>
    %49 = vector.extract_strided_slice %48 {offsets = [0, 0], sizes = [32, 1], strides = [1, 1]} : vector<64x1xf32> to vector<32x1xf32>
    %50 = vector.broadcast %49 : vector<32x1xf32> to vector<32x256xf32>
    %51 = arith.mulf %45, %50 : vector<32x256xf32>
    %52 = vector.extract_strided_slice %48 {offsets = [32, 0], sizes = [32, 1], strides = [1, 1]} : vector<64x1xf32> to vector<32x1xf32>
    %53 = vector.broadcast %52 : vector<32x1xf32> to vector<32x256xf32>
    %54 = arith.addf %51, %53 : vector<32x256xf32>
    %cst_23 = arith.constant 0.000000e+00 : f32
    %55 = vector.broadcast %cst_23 : f32 to vector<1x256xf32>
    %c0_24 = arith.constant 0 : index
    %c0_25 = arith.constant 0 : index
    %c0_26 = arith.constant 0 : index
    %56 = vector.load %arg9[%c0_24, %c0_25, %c0_26] : memref<4x32x256xf32, #tpu.memory_space<vmem>>, vector<1x32x256xf32>
    %57 = vector.shape_cast %56 : vector<1x32x256xf32> to vector<32x256xf32>
    %58 = arith.mulf %54, %57 : vector<32x256xf32>
    %cst_27 = arith.constant dense<0.000000e+00> : vector<256xf32>
    %59 = vector.multi_reduction <add>, %58, %cst_27 [0] : vector<32x256xf32> to vector<256xf32>
    %60 = vector.shape_cast %59 : vector<256xf32> to vector<1x256xf32>
    %61 = vector.extract_strided_slice %1 {offsets = [0, 0], sizes = [1, 256], strides = [1, 1]} : vector<4x256xf32> to vector<1x256xf32>
    %62 = arith.addf %60, %61 : vector<1x256xf32>
    %63 = vector.extract_strided_slice %8 {offsets = [0, 0], sizes = [1, 256], strides = [1, 1]} : vector<4x256xf32> to vector<1x256xf32>
    %64 = arith.subf %63, %62 : vector<1x256xf32>
    %65 = arith.mulf %64, %64 : vector<1x256xf32>
    %66 = arith.addf %55, %65 : vector<1x256xf32>
    %c1_28 = arith.constant 1 : index
    %c0_29 = arith.constant 0 : index
    %c0_30 = arith.constant 0 : index
    %67 = vector.load %arg9[%c1_28, %c0_29, %c0_30] : memref<4x32x256xf32, #tpu.memory_space<vmem>>, vector<1x32x256xf32>
    %68 = vector.shape_cast %67 : vector<1x32x256xf32> to vector<32x256xf32>
    %69 = arith.mulf %54, %68 : vector<32x256xf32>
    %cst_31 = arith.constant dense<0.000000e+00> : vector<256xf32>
    %70 = vector.multi_reduction <add>, %69, %cst_31 [0] : vector<32x256xf32> to vector<256xf32>
    %71 = vector.shape_cast %70 : vector<256xf32> to vector<1x256xf32>
    %72 = vector.extract_strided_slice %1 {offsets = [1, 0], sizes = [1, 256], strides = [1, 1]} : vector<4x256xf32> to vector<1x256xf32>
    %73 = arith.addf %71, %72 : vector<1x256xf32>
    %74 = vector.extract_strided_slice %8 {offsets = [1, 0], sizes = [1, 256], strides = [1, 1]} : vector<4x256xf32> to vector<1x256xf32>
    %75 = arith.subf %74, %73 : vector<1x256xf32>
    %76 = arith.mulf %75, %75 : vector<1x256xf32>
    %77 = arith.addf %66, %76 : vector<1x256xf32>
    %c2_32 = arith.constant 2 : index
    %c0_33 = arith.constant 0 : index
    %c0_34 = arith.constant 0 : index
    %78 = vector.load %arg9[%c2_32, %c0_33, %c0_34] : memref<4x32x256xf32, #tpu.memory_space<vmem>>, vector<1x32x256xf32>
    %79 = vector.shape_cast %78 : vector<1x32x256xf32> to vector<32x256xf32>
    %80 = arith.mulf %54, %79 : vector<32x256xf32>
    %cst_35 = arith.constant dense<0.000000e+00> : vector<256xf32>
    %81 = vector.multi_reduction <add>, %80, %cst_35 [0] : vector<32x256xf32> to vector<256xf32>
    %82 = vector.shape_cast %81 : vector<256xf32> to vector<1x256xf32>
    %83 = vector.extract_strided_slice %1 {offsets = [2, 0], sizes = [1, 256], strides = [1, 1]} : vector<4x256xf32> to vector<1x256xf32>
    %84 = arith.addf %82, %83 : vector<1x256xf32>
    %85 = vector.extract_strided_slice %8 {offsets = [2, 0], sizes = [1, 256], strides = [1, 1]} : vector<4x256xf32> to vector<1x256xf32>
    %86 = arith.subf %85, %84 : vector<1x256xf32>
    %87 = arith.mulf %86, %86 : vector<1x256xf32>
    %88 = arith.addf %77, %87 : vector<1x256xf32>
    %c3_36 = arith.constant 3 : index
    %c0_37 = arith.constant 0 : index
    %c0_38 = arith.constant 0 : index
    %89 = vector.load %arg9[%c3_36, %c0_37, %c0_38] : memref<4x32x256xf32, #tpu.memory_space<vmem>>, vector<1x32x256xf32>
    %90 = vector.shape_cast %89 : vector<1x32x256xf32> to vector<32x256xf32>
    %91 = arith.mulf %54, %90 : vector<32x256xf32>
    %cst_39 = arith.constant dense<0.000000e+00> : vector<256xf32>
    %92 = vector.multi_reduction <add>, %91, %cst_39 [0] : vector<32x256xf32> to vector<256xf32>
    %93 = vector.shape_cast %92 : vector<256xf32> to vector<1x256xf32>
    %94 = vector.extract_strided_slice %1 {offsets = [3, 0], sizes = [1, 256], strides = [1, 1]} : vector<4x256xf32> to vector<1x256xf32>
    %95 = arith.addf %93, %94 : vector<1x256xf32>
    %96 = vector.extract_strided_slice %8 {offsets = [3, 0], sizes = [1, 256], strides = [1, 1]} : vector<4x256xf32> to vector<1x256xf32>
    %97 = arith.subf %96, %95 : vector<1x256xf32>
    %98 = arith.mulf %97, %97 : vector<1x256xf32>
    %99 = arith.addf %88, %98 : vector<1x256xf32>
    %100 = arith.index_cast %c0_i32 : i32 to index
    %c0_40 = arith.constant 0 : index
    %c0_41 = arith.constant 0 : index
    %101 = vector.load %arg3[%100, %c0_40, %c0_41] : memref<1x1x1xf32, #tpu.memory_space<vmem>>, vector<1x1x1xf32>
    %102 = vector.shape_cast %101 : vector<1x1x1xf32> to vector<1x1xf32>
    %103 = vector.broadcast %102 : vector<1x1xf32> to vector<1x256xf32>
    %104 = arith.mulf %103, %99 : vector<1x256xf32>
    %105 = arith.addf %2, %104 : vector<1x256xf32>
    %c1_i32 = arith.constant 1 : i32
    %106 = vector.shape_cast %105 : vector<1x256xf32> to vector<1x1x256xf32>
    %c0_42 = arith.constant 0 : index
    %c0_43 = arith.constant 0 : index
    %c0_44 = arith.constant 0 : index
    %107 = vector.load %arg11[%c0_42, %c0_43, %c0_44] : memref<1x1x256xf32, #tpu.memory_space<vmem>>, vector<1x1x256xf32>
    tpu.vector_store %arg11[%c0_42, %c0_43, %c0_44], %106 {strides = array<i32>} : memref<1x1x256xf32, #tpu.memory_space<vmem>>, vector<1x1x256xf32>,
    return
  }
  func.func @transform_0(%arg0: i32) -> (i32, i32, i32) {
    %c0_i32 = arith.constant 0 : i32
    %c0_i32_0 = arith.constant 0 : i32
    %c0_i32_1 = arith.constant 0 : i32
    return %arg0, %c0_i32, %c0_i32_0 : i32, i32, i32
  }
  func.func @transform_1(%arg0: i32) -> (i32, i32, i32) {
    %c0_i32 = arith.constant 0 : i32
    %c0_i32_0 = arith.constant 0 : i32
    %c0_i32_1 = arith.constant 0 : i32
    return %arg0, %c0_i32, %c0_i32_0 : i32, i32, i32
  }
  func.func @transform_2(%arg0: i32) -> (i32, i32, i32) {
    %c0_i32 = arith.constant 0 : i32
    %c0_i32_0 = arith.constant 0 : i32
    %c0_i32_1 = arith.constant 0 : i32
    return %arg0, %c0_i32, %c0_i32_0 : i32, i32, i32
  }
  func.func @transform_3(%arg0: i32) -> (i32, i32, i32) {
    %c0_i32 = arith.constant 0 : i32
    %c0_i32_0 = arith.constant 0 : i32
    %c0_i32_1 = arith.constant 0 : i32
    return %arg0, %c0_i32, %c0_i32_0 : i32, i32, i32
  }
  func.func @transform_4(%arg0: i32) -> (i32, i32, i32) {
    %c0_i32 = arith.constant 0 : i32
    %c0_i32_0 = arith.constant 0 : i32
    %c0_i32_1 = arith.constant 0 : i32
    return %arg0, %c0_i32, %c0_i32_0 : i32, i32, i32
  }
  func.func @transform_5(%arg0: i32) -> (i32, i32, i32) {
    %c0_i32 = arith.constant 0 : i32
    %c0_i32_0 = arith.constant 0 : i32
    %c0_i32_1 = arith.constant 0 : i32
    return %arg0, %c0_i32, %c0_i32_0 : i32, i32, i32
  }
  func.func @transform_6(%arg0: i32) -> (i32, i32, i32) {
    %c0_i32 = arith.constant 0 : i32
    %c0_i32_0 = arith.constant 0 : i32
    %c0_i32_1 = arith.constant 0 : i32
    %c0_i32_2 = arith.constant 0 : i32
    return %c0_i32, %c0_i32_0, %c0_i32_1 : i32, i32, i32
  }
  func.func @transform_7(%arg0: i32) -> (i32, i32) {
    %c0_i32 = arith.constant 0 : i32
    %c0_i32_0 = arith.constant 0 : i32
    %c0_i32_1 = arith.constant 0 : i32
    return %c0_i32, %c0_i32_0 : i32, i32
  }
  func.func @transform_8(%arg0: i32) -> (i32, i32, i32) {
    %c0_i32 = arith.constant 0 : i32
    %c0_i32_0 = arith.constant 0 : i32
    %c0_i32_1 = arith.constant 0 : i32
    %c0_i32_2 = arith.constant 0 : i32
    return %c0_i32, %c0_i32_0, %c0_i32_1 : i32, i32, i32
  }
  func.func @transform_9(%arg0: i32) -> (i32, i32) {
    %c0_i32 = arith.constant 0 : i32
    %c0_i32_0 = arith.constant 0 : i32
    %c0_i32_1 = arith.constant 0 : i32
    return %c0_i32, %c0_i32_0 : i32, i32
  }
  func.func @transform_10(%arg0: i32) -> (i32, i32, i32) {
    %c0_i32 = arith.constant 0 : i32
    %c0_i32_0 = arith.constant 0 : i32
    %c0_i32_1 = arith.constant 0 : i32
    return %arg0, %c0_i32, %c0_i32_0 : i32, i32, i32
  }
}

</mosaic_0001>

<bundles_post_ra>
// kernel: tpu_custom_call.1
= control target key start
LH: loop header
LB: loop body
LE: loop exit
PB: predicated region body
PF: predicated region fallthrough
CT: control target
= control target key end

     0   :  { %15 = vsyncpa [#allocation3], 0  ;;  %s1634_s0 = inlined_call_operand.vmem [shape: f32[2,1,1], index: 0, kind: input, shape index: {}]   ;;  %s1635_s1 = inlined_call_operand.vmem [shape: f32[2,1,1], index: 1, kind: input, shape index: {}]   ;;  %s1636_s2 = inlined_call_operand.vmem [shape: f32[2,1,1], index: 2, kind: input, shape index: {}]   ;;  %s1637_s3 = inlined_call_operand.vmem [shape: f32[2,4,256], index: 3, kind: input, shape index: {}]   ;;  %s1638_s4 = inlined_call_operand.vmem [shape: f32[2,4,256], index: 4, kind: input, shape index: {}]   ;;  %s1639_s5 = inlined_call_operand.vmem [shape: f32[2,64,1], index: 5, kind: input, shape index: {}]   ;;  %s1640_s6 = inlined_call_operand.hbm [shape: f32[4,32,256], index: 6, kind: input, shape index: {}]   ;;  %s1641_s7 = inlined_call_operand.vmem [shape: f32[32,256], index: 7, kind: input, shape index: {}]   ;;  %s1642_s8 = inlined_call_operand.hbm [shape: f32[4,32,256], index: 8, kind: input, shape index: {}]   ;;  %s1643_s9 = inlined_call_operand.vmem [shape: f32[4,256], index: 9, kind: input, shape index: {}]   ;;  %s1644_s10 = inlined_call_operand.hbm [shape: f32[2,1,256], index: 10, kind: output, shape index: {}]  }
   0x1   :  { %16 = vsyncpa [#allocation6], 0 }
   0x2   :  { %17 = vsyncpa [#allocation4], 0 }
   0x3   :  { %19 = vsyncpa [#allocation4 + $0x1], 0  ;;  %s1362_s13 = smov 0   ;;  %s1364_s14 = smov 0  }
   0x4   :  { %s1366_s15 = smov 0   ;;  %s1368_s16 = smov 0  }
   0x5 LB: > { %s1383_s17 = sadd.s32 4294967295, %s1300_s16   ;;  %s1077_s18 = sadd.s32 4294967294, %s1300_s16   ;;  %s1300_s16 = sphi %s1368_s16, %s1653_s16   ;;  %s1296_s15 = sphi %s1366_s15, %s1652_s15   ;;  %s1292_s14 = sphi %s1364_s14, %s1651_s14   ;;  %s1288_s13 = sphi %s1362_s13, %s1650_s13  }
   0x6   : > { %s1387_s19 = sadd.s32 1, %s1300_s16   ;;  %s272_s20 = sadd.s32 1, %s1296_s15 }
   0x7   : > { %s269_s21 = ssub.s32 %s1300_s16, %s1387_s19  ;;  %p282_p0 = scmp.ne.s32.totalorder %s1296_s15, %s1292_s14 }
   0x8   : > { %p270_p1 = scmp.eq.s32.totalorder %s269_s21, 0  ;;  %p283_p2 = scmp.eq.s32.totalorder %s1383_s17, 1 }
   0x9   : > { %p288_p3 = scmp.ne.s32.totalorder %s1292_s14, %s1288_s13  ;;  %p289_p4 = scmp.eq.s32.totalorder %s1077_s18, 1 }
   0xa   : > { %s1398_s22 = scalar_select %p270_p1, %s1296_s15, %s272_s20  }
   0xb   : > { %p1400_p5 = por %p283_p2, %p282_p0  ;;  %p1404_p6 = por %p289_p4, %p288_p3 }
   0xc   : > { %1645 = sst [smem:[#allocation11_spill]] %s1398_s22  ;;  %p1078_p7 = scmp.ge.s32.totalorder %s1300_s16, 1 }
   0xd   : > { %p296_p8 = scmp.lt.s32.totalorder %s1300_s16, 3  ;;  %p1123_p9 = scmp.eq.s32.totalorder %s1383_s17, 0 }
   0xe   : > { %s307_s28 = sshll.u32 %s1640_s6, 4  ;;  %s1302_s29 = smov [#allocation2]   ;;  %s308_s28 = int_to_ptr.hbm [resolvable:$true] %s307_s28 }
   0xf   : > { %p1411_p10 = pnand %p1078_p7, %p296_p8  ;;  %s309_s30 = sshll.u32 %s1302_s29, 4  ;;  %s310_s30 = int_to_ptr.vmem [resolvable:$true] %s309_s30 }
  0x10   : > { %s324_s18 = sshll.u32 %s1642_s8, 4  ;;  %s1303_s20 = smov 256   ;;  %s325_s18 = int_to_ptr.hbm [resolvable:$true] %s324_s18 }
  0x11   : > { %p1112_p11 = pneg %p1411_p10  ;;  %s1304_s21 = smov 16  }
  0x12   : > { %s1305_s22 = smov [#allocation5]   ;;  %387 = sbr.rel (%p1411_p10) target bundleno = 239 (0xef), region = 60 }
  0x13   : > { %p1113_p12 = pnand %p1123_p9, %p1112_p11  ;;  %s326_s26 = sshll.u32 %s1305_s22, 4  ;;  %s327_s26 = int_to_ptr.vmem [resolvable:$true] %s326_s26 }
  0x15   : > { %1115 = dma.hbm_to_vmem [thread:$0]  (!%p1113_p12), %s308_s28, 4096, %s310_s30, [#allocation3], %s1303_s20, %s1303_s20, %s1304_s21  }
  0x16   : > { %1118 = dma.hbm_to_vmem [thread:$0]  (!%p1113_p12), %s325_s18, 4096, %s327_s26, [#allocation6], %s1303_s20, %s1303_s20, %s1304_s21  }
  0x17   : > { %1275 = dma.done.wait (%p1123_p9), [#allocation3], 4096  }
  0x18   : > { %1277 = vsyncadd (%p1123_p9), [#allocation3], 4294963200 }
  0x19   : > { %1279 = dma.done.wait (%p1123_p9), [#allocation6], 4096  }
  0x1a   : > { %1281 = vsyncadd (%p1123_p9), [#allocation6], 4294963200  ;;  %p450_p13 = scmp.lt.s32.totalorder %s1383_s17, 1  ;;  %v1306_v0 = vmov 0   ;;  %v502_v20 = vld [vmem:[#allocation2] sm:$0xff]  ;;  %v503_v21 = vld [vmem:[#allocation2 + $0x8] sm:$0xff] }
  0x1b   : > { %1166 = vset.pattern.permute.xlu1 %v1306_v0  ;;  %1165 = vset.pattern.permute.xlu0 %v1306_v0  ;;  %v508_v22 = vld [vmem:[#allocation2 + $0x30] sm:$0xff]  ;;  %v509_v23 = vld [vmem:[#allocation2 + $0x38] sm:$0xff]  ;;  %v474_v28 = vld [vmem:[%s1641_s7] sm:$0xff]  ;;  %vm742_vm0 = vcmask 1043456   ;;  %vm921_vm1 = vcmask 1040384  }
  0x1c   : > { %s1437_s22 = scalar_select %p450_p13, %s1383_s17, 1  ;;  %1167 = vset.pattern.permute.xlu2 %v1306_v0  ;;  %v475_v29 = vld [vmem:[%s1641_s7 + $0x8] sm:$0xff]  ;;  %v480_v30 = vld [vmem:[%s1641_s7 + $0x30] sm:$0xff]  ;;  %v534_v31 = vld [vmem:[#allocation2 + $0x40] sm:$0xff] }
  0x1d   : > { %v535_v32 = vld [vmem:[#allocation2 + $0x48] sm:$0xff]  ;;  %v540_v39 = vld [vmem:[#allocation2 + $0x70] sm:$0xff]  ;;  %v541_v40 = vld [vmem:[#allocation2 + $0x78] sm:$0xff] }
  0x1e   : > { %s1101_s25 = sshll.u32 %s1437_s22, 6  ;;  %s452_s29 = scalar_lea.vmem %s1634_s0, %s1437_s22  ;;  %v481_v43 = vld [vmem:[%s1641_s7 + $0x38] sm:$0xff]  ;;  %v565_v44 = vld [vmem:[#allocation2 + $0x80] sm:$0xff]  ;;  %v566_v54 = vld [vmem:[#allocation2 + $0x88] sm:$0xff] }
  0x1f   : > { %s473_s12 = scalar_lea.vmem %s1639_s5, %s1101_s25  ;;  %v1168_v2 = vld [vmem:[%s452_s29] ss:$0 sm:$0xff]  ;;  %s455_s21 = scalar_lea.vmem %s1635_s1, %s1437_s22  ;;  %v571_v55 = vld [vmem:[#allocation2 + $0xb0] sm:$0xff]  ;;  %v572_v56 = vld [vmem:[#allocation2 + $0xb8] sm:$0xff] }
  0x20   : > { %v634_v1 = vld [vmem:[%s473_s12] sm:$0xff]  ;;  %489 = vperm.xlu0 %1165, %v1168_v2   ;;  %v636_v3 = vld [vmem:[%s473_s12 + $0x10] sm:$0xff]  ;;  %v635_v4 = vld [vmem:[%s473_s12 + $0x8] sm:$0xff]  ;;  %s458_s27 = scalar_lea.vmem %s1636_s2, %s1437_s22  ;;  %s1099_s28 = sshll.u32 %s1437_s22, 3 }
  0x21   : > { %644 = vperm.xlu1 %1166, %v634_v1   ;;  %654 = vperm.xlu2 %1167, %v636_v3   ;;  %v1169_v5 = vld [vmem:[%s455_s21] ss:$0 sm:$0xff]  ;;  %v637_v7 = vld [vmem:[%s473_s12 + $0x18] sm:$0xff]  ;;  %v639_v8 = vld [vmem:[%s473_s12 + $0x28] sm:$0xff]  ;;  %s463_s11 = scalar_lea.vmem %s1637_s3, %s1099_s28  ;;  %s468_s21 = scalar_lea.vmem %s1638_s4, %s1099_s28 }
  0x22   : > { %v638_v6 = vld [vmem:[%s473_s12 + $0x20] sm:$0xff]  ;;  %v640_v9 = vld [vmem:[%s473_s12 + $0x30] sm:$0xff]  ;;  %v641_v11 = vld [vmem:[%s473_s12 + $0x38] sm:$0xff]  ;;  %s447_s29 = sand.u32 1, %s1292_s14  }
  0x23   : > { %v910_v10 = vld [vmem:[%s458_s27] sm:$0x1]  ;;  %v597_v3 = vld [vmem:[#allocation2 + $0xc8] sm:$0xff]  ;;  %s1085_s30 = sshll.u32 %s447_s29, 1 }
  0x24   : > { %v483_v13 = vld [vmem:[%s463_s11] sm:$0xff]  ;;  %s1096_s11 = sshll.u32 %s1383_s17, 1  ;;  %s449_s22 = scalar_lea.vmem [#allocation7], %s1085_s30 }
  0x25   : > { %v1462_v14 = vld [vmem:[%s468_s21] sm:$0xff]  ;;  %s940_s21 = scalar_lea.hbm %s1644_s10, %s1096_s11  ;;  %s942_s12 = sshll.u32 %s449_s22, 4  ;;  %s943_s12 = int_to_ptr.vmem [resolvable:$true] %s942_s12 }
  0x26   : > { %v596_v61 = vld [vmem:[#allocation2 + $0xc0] sm:$0xff]  ;;  %s944_s26 = sshll.u32 %s940_s21, 4  ;;  %s930_s17 = scalar_lea.sflag [#allocation4], %s447_s29  ;;  %s945_s26 = int_to_ptr.hbm [resolvable:$true] %s944_s26 }
  0x27   : > { %s1244_s25 = sshra.s32 %s945_s26, 4  ;;  %s1250_s30 = scalar_lea.hbm %s1644_s10, 4  ;;  %s1245_s25 = int_to_ptr.hbm [resolvable:$true] %s1244_s25 }
  0x28   : > { %497 = vperm.xlu0 %1165, %v1169_v5   ;;  %v603_v5 = vld [vmem:[#allocation2 + $0xf8] sm:$0xff]  ;;  %s1246_s27 = scalar_lea.hbm %s1245_s25, 2  ;;  %p1251_p3 = scmp.lt.s32.totalorder %s1245_s25, %s1644_s10 }
  0x29   : > { %649 = vperm.xlu1 %1166, %v635_v4   ;;  %672 = vperm.xlu2 %1167, %v638_v6   ;;  %v602_v4 = vld [vmem:[#allocation2 + $0xf0] sm:$0xff]  ;;  %p1247_p0 = scmp.ne.s32.totalorder %s1245_s25, %s1246_s27  ;;  %p1252_p4 = scmp.lt.s32.totalorder %s1250_s30, %s1246_s27 }
  0x2b   : > { %p1248_p1 = pnand %p1247_p0, %p1400_p5  ;;  %p1253_p7 = por %p1252_p4, %p1251_p3 }
  0x2d   : > { %p1249_p2 = pneg %p1248_p1 }
  0x2f   : > { %p1254_p8 = pnand %p1253_p7, %p1249_p2 }
  0x30   : > { %677 = vperm.xlu0 %1165, %v639_v8  }
  0x31   : > { %659 = vperm.xlu1 %1166, %v637_v7   ;;  %682 = vperm.xlu2 %1167, %v640_v9  }
  0x38   : > { %687 = vperm.xlu0 %1165, %v641_v11  }
  0x39   : > { %913 = vperm.xlu1 %1166, %v910_v10  }
  0x7b   : > { %v1495_v49 = vpop.permute.xlu2 %654 }
  0x92   : > { %v490_v12 = vpop.permute.xlu0 %489 }
  0x93   : > { %v1464_v16 = vpop.permute.xlu1 %644  ;;  %v492_v17 = vmul.f32 %v490_v12, %v483_v13 }
  0x9a   : > { %v498_v15 = vpop.permute.xlu0 %497 }
  0x9b   : > { %v500_v18 = vmul.f32 %v498_v15, %v1462_v14  ;;  %v1505_v62 = vpop.permute.xlu1 %649  ;;  %v506_v15 = vld [vmem:[#allocation2 + $0x20] sm:$0xff] }
  0x9d   : > { %v501_v19 = vadd.f32 %v500_v18, %v492_v17  ;;  %v507_v17 = vld [vmem:[#allocation2 + $0x28] sm:$0xff] }
  0x9f   : > { %v511_v24 = vperm.slane %v501_v19, 0  ;;  %v512_v25 = vperm.slane %v501_v19, 4  ;;  %v542_v26 = vperm.slane %v501_v19, 1  ;;  %v543_v27 = vperm.slane %v501_v19, 5 }
  0xa0   : > { %v573_v33 = vperm.slane %v501_v19, 2  ;;  %v574_v34 = vperm.slane %v501_v19, 6  ;;  %v604_v35 = vperm.slane %v501_v19, 3  ;;  %v605_v36 = vperm.slane %v501_v19, 7 }
  0xa1   : > { %v1476_v37 = vperm.slane %v511_v24, 0  ;;  %v1478_v38 = vperm.slane %v512_v25, 0  ;;  %v1480_v41 = vperm.slane %v542_v26, 1  ;;  %v1482_v42 = vperm.slane %v543_v27, 1  ;;  %v479_v27 = vld [vmem:[%s1641_s7 + $0x28] sm:$0xff] }
  0xa2   : > { %v1487_v45 = vperm.slane %v573_v33, 2  ;;  %v1489_v46 = vperm.slane %v574_v34, 2  ;;  %v1491_v47 = vperm.slane %v604_v35, 3  ;;  %v1493_v48 = vperm.slane %v605_v36, 3  ;;  %v570_v33 = vld [vmem:[#allocation2 + $0xa8] sm:$0xff] }
  0xa3   : > { %v517_v50 = vmul.f32 %v1476_v37, %v502_v20  ;;  %v518_v51 = vmul.f32 %v1478_v38, %v503_v21  ;;  %v523_v52 = vmul.f32 %v1476_v37, %v508_v22  ;;  %v524_v53 = vmul.f32 %v1478_v38, %v509_v23  ;;  %v478_v22 = vld [vmem:[%s1641_s7 + $0x20] sm:$0xff] }
  0xa4   : > { %v548_v57 = vmul.f32 %v1480_v41, %v534_v31  ;;  %v549_v58 = vmul.f32 %v1482_v42, %v535_v32  ;;  %v554_v59 = vmul.f32 %v1480_v41, %v540_v39  ;;  %v555_v60 = vmul.f32 %v1482_v42, %v541_v40  ;;  %v569_v32 = vld [vmem:[#allocation2 + $0xa0] sm:$0xff] }
  0xa5   : > { %v525_v63 = vadd.f32 %v517_v50, %v474_v28  ;;  %v526_v0 = vadd.f32 %v518_v51, %v475_v29  ;;  %v531_v1 = vadd.f32 %v523_v52, %v480_v30  ;;  %v532_v2 = vadd.f32 %v524_v53, %v481_v43  ;;  %v538_v28 = vld [vmem:[#allocation2 + $0x60] sm:$0xff]  ;;  %v539_v29 = vld [vmem:[#allocation2 + $0x68] sm:$0xff]  ;;  %v1523_v43 = vpop.permute.xlu0 %677 }
  0xa6   : > { %v579_v6 = vmul.f32 %v1487_v45, %v565_v44  ;;  %v580_v7 = vmul.f32 %v1489_v46, %v566_v54  ;;  %v585_v8 = vmul.f32 %v1487_v45, %v571_v55  ;;  %v586_v9 = vmul.f32 %v1489_v46, %v572_v56  ;;  %v600_v40 = vld [vmem:[#allocation2 + $0xe0] sm:$0xff]  ;;  %v601_v53 = vld [vmem:[#allocation2 + $0xe8] sm:$0xff]  ;;  %v504_v54 = vld [vmem:[#allocation2 + $0x10] sm:$0xff]  ;;  %v673_v56 = vpop.permute.xlu2 %672 }
  0xa7   : > { %v556_v10 = vadd.f32 %v548_v57, %v525_v63  ;;  %v557_v11 = vadd.f32 %v549_v58, %v526_v0  ;;  %v562_v12 = vadd.f32 %v554_v59, %v531_v1  ;;  %v563_v13 = vadd.f32 %v555_v60, %v532_v2  ;;  %v505_v55 = vld [vmem:[#allocation2 + $0x18] sm:$0xff] }
  0xa8   : > { %v610_v18 = vmul.f32 %v1491_v47, %v596_v61  ;;  %v611_v19 = vmul.f32 %v1493_v48, %v597_v3  ;;  %v616_v20 = vmul.f32 %v1491_v47, %v602_v4  ;;  %v617_v21 = vmul.f32 %v1493_v48, %v603_v5  ;;  %v536_v61 = vld [vmem:[#allocation2 + $0x50] sm:$0xff]  ;;  %v537_v3 = vld [vmem:[#allocation2 + $0x58] sm:$0xff] }
  0xa9   : > { %v587_v23 = vadd.f32 %v579_v6, %v556_v10  ;;  %v588_v24 = vadd.f32 %v580_v7, %v557_v11  ;;  %v593_v25 = vadd.f32 %v585_v8, %v562_v12  ;;  %v594_v26 = vadd.f32 %v586_v9, %v563_v13  ;;  %v476_v4 = vld [vmem:[%s1641_s7 + $0x10] sm:$0xff]  ;;  %v477_v5 = vld [vmem:[%s1641_s7 + $0x18] sm:$0xff]  ;;  %v660_v6 = vpop.permute.xlu1 %659 }
  0xaa   : > { %v521_v30 = vmul.f32 %v1476_v37, %v506_v15  ;;  %v522_v31 = vmul.f32 %v1478_v38, %v507_v17  ;;  %v552_v51 = vmul.f32 %v1480_v41, %v538_v28  ;;  %v553_v52 = vmul.f32 %v1482_v42, %v539_v29  ;;  %v567_v9 = vld [vmem:[#allocation2 + $0x90] sm:$0xff]  ;;  %v568_v10 = vld [vmem:[#allocation2 + $0x98] sm:$0xff] }
  0xab   : > { %v618_v34 = vadd.f32 %v610_v18, %v587_v23  ;;  %v619_v35 = vadd.f32 %v611_v19, %v588_v24  ;;  %v624_v36 = vadd.f32 %v616_v20, %v593_v25  ;;  %v625_v39 = vadd.f32 %v617_v21, %v594_v26  ;;  %v598_v19 = vld [vmem:[#allocation2 + $0xd0] sm:$0xff]  ;;  %v599_v20 = vld [vmem:[#allocation2 + $0xd8] sm:$0xff] }
  0xac   : > { %v529_v44 = vadd.f32 %v521_v30, %v478_v22  ;;  %v530_v50 = vadd.f32 %v522_v31, %v479_v27  ;;  %v583_v59 = vmul.f32 %v1487_v45, %v569_v32  ;;  %v584_v60 = vmul.f32 %v1489_v46, %v570_v33  ;;  %v698_v33 = vld [vmem:[#allocation5] sm:$0xff] }
  0xad   : > { %v632_v57 = vmax.f32 %v624_v36, 0.0  ;;  %v633_v58 = vmax.f32 %v625_v39, 0.0  ;;  %v626_v63 = vmax.f32 %v618_v34, 0.0  ;;  %v627_v0 = vmax.f32 %v619_v35, 0.0  ;;  %v699_v34 = vld [vmem:[#allocation5 + $0x8] sm:$0xff]  ;;  %v702_v35 = vld [vmem:[#allocation5 + $0x20] sm:$0xff] }
  0xae   : > { %v560_v1 = vadd.f32 %v552_v51, %v529_v44  ;;  %v561_v2 = vadd.f32 %v553_v52, %v530_v50  ;;  %v614_v7 = vmul.f32 %v1491_v47, %v600_v40  ;;  %v615_v8 = vmul.f32 %v1493_v48, %v601_v53  ;;  %v749_v36 = vld [vmem:[#allocation5 + $0x40] sm:$0xff]  ;;  %v750_v39 = vld [vmem:[#allocation5 + $0x48] sm:$0xff]  ;;  %v688_v50 = vpop.permute.xlu0 %687 }
  0xaf   : > { %v519_v11 = vmul.f32 %v1476_v37, %v504_v54  ;;  %v520_v12 = vmul.f32 %v1478_v38, %v505_v55  ;;  %v668_v13 = vmul.f32 %v660_v6, %v632_v57  ;;  %v669_v15 = vmul.f32 %v660_v6, %v633_v58  ;;  %v703_v51 = vld [vmem:[#allocation5 + $0x28] sm:$0xff]  ;;  %v803_v53 = vld [vmem:[#allocation5 + $0x80] sm:$0xff] }
  0xb0   : > { %v591_v17 = vadd.f32 %v583_v59, %v560_v1  ;;  %v592_v18 = vadd.f32 %v584_v60, %v561_v2  ;;  %v550_v23 = vmul.f32 %v1480_v41, %v536_v61  ;;  %v551_v24 = vmul.f32 %v1482_v42, %v537_v3  ;;  %v804_v54 = vld [vmem:[#allocation5 + $0x88] sm:$0xff]  ;;  %v807_v58 = vld [vmem:[#allocation5 + $0xa0] sm:$0xff]  ;;  %v683_v59 = vpop.permute.xlu2 %682 }
  0xb1   : > { %v527_v21 = vadd.f32 %v519_v11, %v476_v4  ;;  %v528_v22 = vadd.f32 %v520_v12, %v477_v5  ;;  %v581_v27 = vmul.f32 %v1487_v45, %v567_v9  ;;  %v582_v37 = vmul.f32 %v1489_v46, %v568_v10  ;;  %v754_v57 = vld [vmem:[#allocation5 + $0x68] sm:$0xff]  ;;  %v861_v1 = vld [vmem:[#allocation5 + $0xe0] sm:$0xff] }
  0xb2   : > { %v622_v25 = vadd.f32 %v614_v7, %v591_v17  ;;  %v623_v26 = vadd.f32 %v615_v8, %v592_v18  ;;  %v662_v29 = vmul.f32 %v1464_v16, %v626_v63  ;;  %v663_v30 = vmul.f32 %v1464_v16, %v627_v0  ;;  %v808_v0 = vld [vmem:[#allocation5 + $0xa8] sm:$0xff]  ;;  %v857_v6 = vld [vmem:[#allocation5 + $0xc0] sm:$0xff]  ;;  %v704_v18 = vld [vmem:[#allocation5 + $0x30] sm:$0xff] }
  0xb3   : > { %v558_v28 = vadd.f32 %v550_v23, %v527_v21  ;;  %v559_v38 = vadd.f32 %v551_v24, %v528_v22  ;;  %v612_v41 = vmul.f32 %v1491_v47, %v598_v19  ;;  %v613_v42 = vmul.f32 %v1493_v48, %v599_v20  ;;  %v753_v48 = vld [vmem:[#allocation5 + $0x60] sm:$0xff]  ;;  %v862_v2 = vld [vmem:[#allocation5 + $0xe8] sm:$0xff]  ;;  %v705_v19 = vld [vmem:[#allocation5 + $0x38] sm:$0xff] }
  0xb4   : > { %v630_v31 = vmax.f32 %v622_v25, 0.0  ;;  %v631_v32 = vmax.f32 %v623_v26, 0.0  ;;  %v690_v46 = vadd.f32 %v673_v56, %v662_v29  ;;  %v691_v44 = vadd.f32 %v673_v56, %v663_v30  ;;  %v858_v7 = vld [vmem:[#allocation5 + $0xc8] sm:$0xff]  ;;  %v1556_v20 = vld [vmem:[%s1643_s9] sm:$0xff]  ;;  %v700_v25 = vld [vmem:[#allocation5 + $0x10] sm:$0xff] }
  0xb5   : > { %v589_v45 = vadd.f32 %v581_v27, %v558_v28  ;;  %v590_v40 = vadd.f32 %v582_v37, %v559_v38  ;;  %v1549_v55 = vadd.f32 %v688_v50, %v668_v13  ;;  %v1551_v47 = vadd.f32 %v688_v50, %v669_v15  ;;  %v755_v26 = vld [vmem:[#allocation5 + $0x70] sm:$0xff]  ;;  %v756_v27 = vld [vmem:[#allocation5 + $0x78] sm:$0xff] }
  0xb6   : > { %v666_v52 = vmul.f32 %v1495_v49, %v630_v31  ;;  %v667_v16 = vmul.f32 %v1495_v49, %v631_v32  ;;  %v706_v63 = vmul.f32 %v698_v33, %v690_v46  ;;  %v707_v56 = vmul.f32 %v699_v34, %v691_v44  ;;  %v701_v37 = vld [vmem:[#allocation5 + $0x18] sm:$0xff]  ;;  %v809_v31 = vld [vmem:[#allocation5 + $0xb0] sm:$0xff] }
  0xb7   : > { %v620_v60 = vadd.f32 %v612_v41, %v589_v45  ;;  %v621_v61 = vadd.f32 %v613_v42, %v590_v40  ;;  %v757_v49 = vmul.f32 %v749_v36, %v690_v46  ;;  %v758_v5 = vmul.f32 %v750_v39, %v691_v44  ;;  %v810_v32 = vld [vmem:[#allocation5 + $0xb8] sm:$0xff]  ;;  %v751_v33 = vld [vmem:[#allocation5 + $0x50] sm:$0xff] }
  0xb8   : > { %v694_v3 = vadd.f32 %v683_v59, %v666_v52  ;;  %v695_v4 = vadd.f32 %v683_v59, %v667_v16  ;;  %v811_v10 = vmul.f32 %v803_v53, %v690_v46  ;;  %v812_v11 = vmul.f32 %v804_v54, %v691_v44  ;;  %v752_v34 = vld [vmem:[#allocation5 + $0x58] sm:$0xff]  ;;  %v805_v41 = vld [vmem:[#allocation5 + $0x90] sm:$0xff] }
  0xb9   : > { %v628_v8 = vmax.f32 %v620_v60, 0.0  ;;  %v629_v9 = vmax.f32 %v621_v61, 0.0  ;;  %v865_v29 = vmul.f32 %v857_v6, %v690_v46  ;;  %v866_v30 = vmul.f32 %v858_v7, %v691_v44  ;;  %v806_v45 = vld [vmem:[#allocation5 + $0x98] sm:$0xff]  ;;  %v859_v40 = vld [vmem:[#allocation5 + $0xd0] sm:$0xff] }
  0xba   : > { %v710_v12 = vmul.f32 %v702_v35, %v694_v3  ;;  %v711_v13 = vmul.f32 %v703_v51, %v695_v4  ;;  %v761_v15 = vmul.f32 %v753_v48, %v694_v3  ;;  %v762_v17 = vmul.f32 %v754_v57, %v695_v4  ;;  %v860_v50 = vld [vmem:[#allocation5 + $0xd8] sm:$0xff] }
  0xbb   : > { %v815_v21 = vmul.f32 %v807_v58, %v694_v3  ;;  %v816_v22 = vmul.f32 %v808_v0, %v695_v4  ;;  %v1558_v23 = vmul.f32 %v861_v1, %v694_v3  ;;  %v1560_v24 = vmul.f32 %v862_v2, %v695_v4 }
  0xbc   : > { %v664_v28 = vmul.f32 %v1505_v62, %v628_v8  ;;  %v665_v38 = vmul.f32 %v1505_v62, %v629_v9  ;;  %v712_v42 = vmul.f32 %v704_v18, %v1549_v55  ;;  %v713_v35 = vmul.f32 %v705_v19, %v1551_v47  ;;  %v863_v18 = vld [vmem:[#allocation5 + $0xf0] sm:$0xff]  ;;  %v864_v19 = vld [vmem:[#allocation5 + $0xf8] sm:$0xff] }
  0xbd   : > { %v733_v36 = vperm.slane %v1556_v20, 0  ;;  %v734_v39 = vperm.slane %v1556_v20, 4  ;;  %v763_v44 = vmul.f32 %v755_v26, %v1549_v55  ;;  %v764_v51 = vmul.f32 %v756_v27, %v1551_v47 }
  0xbe   : > { %v692_v62 = vadd.f32 %v1523_v43, %v664_v28  ;;  %v693_v46 = vadd.f32 %v1523_v43, %v665_v38  ;;  %v783_v52 = vperm.slane %v1556_v20, 1  ;;  %v784_v16 = vperm.slane %v1556_v20, 5 }
  0xbf   : > { %v817_v53 = vmul.f32 %v809_v31, %v1549_v55  ;;  %v818_v54 = vmul.f32 %v810_v32, %v1551_v47  ;;  %v837_v31 = vperm.slane %v1556_v20, 2  ;;  %v838_v32 = vperm.slane %v1556_v20, 6 }
  0xc0   : > { %v708_v48 = vmul.f32 %v700_v25, %v692_v62  ;;  %v709_v57 = vmul.f32 %v701_v37, %v693_v46  ;;  %v759_v58 = vmul.f32 %v751_v33, %v692_v62  ;;  %v760_v59 = vmul.f32 %v752_v34, %v693_v46 }
  0xc1   : > { %v813_v60 = vmul.f32 %v805_v41, %v692_v62  ;;  %v814_v61 = vmul.f32 %v806_v45, %v693_v46  ;;  %v867_v0 = vmul.f32 %v859_v40, %v692_v62  ;;  %v868_v43 = vmul.f32 %v860_v50, %v693_v46 }
  0xc2   : > { %v714_v1 = vadd.f32 %v708_v48, %v706_v63  ;;  %v723_v2 = vadd.f32 %v709_v57, %v707_v56  ;;  %v765_v3 = vadd.f32 %v759_v58, %v757_v49  ;;  %v774_v4 = vadd.f32 %v760_v59, %v758_v5 }
  0xc3   : > { %v819_v6 = vadd.f32 %v813_v60, %v811_v10  ;;  %v828_v7 = vadd.f32 %v814_v61, %v812_v11  ;;  %v873_v8 = vadd.f32 %v867_v0, %v865_v29  ;;  %v882_v9 = vadd.f32 %v868_v43, %v866_v30 }
  0xc4   : > { %v715_v26 = vadd.f32 %v714_v1, %v710_v12  ;;  %v724_v27 = vadd.f32 %v723_v2, %v711_v13  ;;  %v766_v25 = vadd.f32 %v765_v3, %v761_v15  ;;  %v775_v37 = vadd.f32 %v774_v4, %v762_v17 }
  0xc5   : > { %v820_v28 = vadd.f32 %v819_v6, %v815_v21  ;;  %v829_v38 = vadd.f32 %v828_v7, %v816_v22  ;;  %v871_v29 = vmul.f32 %v863_v18, %v1549_v55  ;;  %v872_v30 = vmul.f32 %v864_v19, %v1551_v47 }
  0xc6   : > { %v716_v63 = vadd.f32 %v715_v26, %v712_v42  ;;  %v725_v56 = vadd.f32 %v724_v27, %v713_v35  ;;  %v767_v49 = vadd.f32 %v766_v25, %v763_v44  ;;  %v776_v5 = vadd.f32 %v775_v37, %v764_v51 }
  0xc7   : > { %v821_v10 = vadd.f32 %v820_v28, %v817_v53  ;;  %v830_v11 = vadd.f32 %v829_v38, %v818_v54  ;;  %v874_v33 = vadd.f32 %v873_v8, %v1558_v23  ;;  %v883_v34 = vadd.f32 %v882_v9, %v1560_v24 }
  0xc8   : > { %v717_v12 = vrot.slane %v716_v63, 4  ;;  %v726_v13 = vrot.slane %v725_v56, 4  ;;  %v768_v15 = vrot.slane %v767_v49, 4  ;;  %v777_v17 = vrot.slane %v776_v5, 4 }
  0xc9   : > { %v822_v21 = vrot.slane %v821_v10, 4  ;;  %v831_v22 = vrot.slane %v830_v11, 4  ;;  %v875_v62 = vadd.f32 %v874_v33, %v871_v29  ;;  %v884_v55 = vadd.f32 %v883_v34, %v872_v30 }
  0xca   : > { %v718_v41 = vadd.f32 %v717_v12, %v716_v63  ;;  %v727_v42 = vadd.f32 %v726_v13, %v725_v56  ;;  %v769_v35 = vadd.f32 %v768_v15, %v767_v49  ;;  %v778_v45 = vadd.f32 %v777_v17, %v776_v5 }
  0xcb   : > { %v823_v40 = vadd.f32 %v822_v21, %v821_v10  ;;  %v832_v50 = vadd.f32 %v831_v22, %v830_v11  ;;  %v876_v48 = vrot.slane %v875_v62, 4  ;;  %v885_v57 = vrot.slane %v884_v55, 4 }
  0xcc   : > { %v719_v46 = vrot.slane %v718_v41, 2  ;;  %v728_v47 = vrot.slane %v727_v42, 2  ;;  %v770_v44 = vrot.slane %v769_v35, 2  ;;  %v779_v51 = vrot.slane %v778_v45, 2 }
  0xcd   : > { %v824_v53 = vrot.slane %v823_v40, 2  ;;  %v833_v54 = vrot.slane %v832_v50, 2  ;;  %v877_v0 = vadd.f32 %v876_v48, %v875_v62  ;;  %v886_v43 = vadd.f32 %v885_v57, %v884_v55 }
  0xce   : > { %v720_v58 = vadd.f32 %v719_v46, %v718_v41  ;;  %v729_v23 = vadd.f32 %v728_v47, %v727_v42  ;;  %v771_v59 = vadd.f32 %v770_v44, %v769_v35  ;;  %v780_v24 = vadd.f32 %v779_v51, %v778_v45 }
  0xcf   : > { %v825_v60 = vadd.f32 %v824_v53, %v823_v40  ;;  %v834_v61 = vadd.f32 %v833_v54, %v832_v50  ;;  %v878_v8 = vrot.slane %v877_v0, 2  ;;  %v887_v9 = vrot.slane %v886_v43, 2  ;;  %v914_v54 = vpop.permute.xlu1 %913 }
  0xd0   : > { %v721_v1 = vrot.slane %v720_v58, 1  ;;  %v730_v2 = vrot.slane %v729_v23, 1  ;;  %v772_v3 = vrot.slane %v771_v59, 1  ;;  %v781_v4 = vrot.slane %v780_v24, 1 }
  0xd1   : > { %v826_v6 = vrot.slane %v825_v60, 1  ;;  %v835_v7 = vrot.slane %v834_v61, 1  ;;  %v879_v28 = vadd.f32 %v878_v8, %v877_v0  ;;  %v888_v38 = vadd.f32 %v887_v9, %v886_v43 }
  0xd2   : > { %v722_v18 = vadd.f32 %v721_v1, %v720_v58  ;;  %v731_v19 = vadd.f32 %v730_v2, %v729_v23  ;;  %v773_v26 = vadd.f32 %v772_v3, %v771_v59  ;;  %v782_v27 = vadd.f32 %v781_v4, %v780_v24 }
  0xd3   : > { %v827_v25 = vadd.f32 %v826_v6, %v825_v60  ;;  %v836_v37 = vadd.f32 %v835_v7, %v834_v61  ;;  %v880_v11 = vrot.slane %v879_v28, 1  ;;  %v889_v29 = vrot.slane %v888_v38, 1 }
  0xd4   : > { %v737_v63 = vadd.f32 %v733_v36, %v722_v18  ;;  %v738_v56 = vadd.f32 %v734_v39, %v731_v19  ;;  %v788_v49 = vadd.f32 %v784_v16, %v782_v27  ;;  %v787_v5 = vadd.f32 %v783_v52, %v773_v26 }
  0xd5   : > { %v842_v10 = vadd.f32 %v838_v32, %v836_v37  ;;  %v841_v13 = vadd.f32 %v837_v31, %v827_v25  ;;  %v892_v15 = vperm.slane %v1556_v20, 7  ;;  %v881_v17 = vadd.f32 %v880_v11, %v879_v28 }
  0xd6   : > { %v741_v30 = vrot.slane %v738_v56, 4  ;;  %v791_v12 = vrot.slane %v788_v49, 4  ;;  %v890_v21 = vadd.f32 %v889_v29, %v888_v38  ;;  %v891_v39 = vperm.slane %v1556_v20, 3 }
  0xd7   : > { %v845_v36 = vrot.slane %v842_v10, 4  ;;  %v916_v58 = vperm.slane %v914_v54, 0  ;;  %v924_v59 = vlaneseq }
  0xd8   : > { %v743_v16 = vsel %vm742_vm0, %v737_v63, %v741_v30  ;;  %v792_v52 = vsel %vm742_vm0, %v787_v5, %v791_v12  ;;  %v896_v33 = vadd.f32 %v892_v15, %v890_v21  ;;  %v895_v41 = vadd.f32 %v891_v39, %v881_v17 }
  0xd9   : > { %v793_v32 = vrot.slane %v792_v52, 7  ;;  %v846_v22 = vsel %vm742_vm0, %v841_v13, %v845_v36  ;;  %v745_v31 = vsub.f32 %v1462_v14, %v743_v16  ;;  %vm926_vm2 = vcmp.lt.s32.totalorder %v924_v59, 256 }
  0xda   : > { %v847_v34 = vrot.slane %v846_v22, 6  ;;  %v899_v42 = vrot.slane %v896_v33, 4 }
  0xdb   : > { %v795_v35 = vsub.f32 %v1462_v14, %v793_v32  ;;  %v746_v55 = vmul.f32 %v745_v31, %v745_v31 }
  0xdc   : > { %v849_v45 = vsub.f32 %v1462_v14, %v847_v34  ;;  %v900_v40 = vsel %vm742_vm0, %v895_v41, %v899_v42 }
  0xdd   : > { %v796_v20 = vmul.f32 %v795_v35, %v795_v35  ;;  %v901_v62 = vrot.slane %v900_v40, 5 }
  0xde   : > { %v850_v50 = vmul.f32 %v849_v45, %v849_v45 }
  0xdf   : > { %v1092_v46 = vrot.slane %v796_v20, 9  ;;  %v903_v47 = vsub.f32 %v1462_v14, %v901_v62 }
  0xe0   : > { %v1093_v51 = vrot.slane %v850_v50, 10 }
  0xe1   : > { %v801_v44 = vadd.f32 %v1092_v46, %v746_v55  ;;  %v904_v53 = vmul.f32 %v903_v47, %v903_v47 }
  0xe3   : > { %v855_v48 = vadd.f32 %v1093_v51, %v801_v44  ;;  %v1094_v57 = vrot.slane %v904_v53, 11 }
  0xe5   : > { %v909_v23 = vadd.f32 %v1094_v57, %v855_v48 }
  0xe7   : > { %v917_v24 = vmul.f32 %v916_v58, %v909_v23 }
  0xe9   : > { %v920_v14 = vrot.slane %v917_v24, 3 }
  0xeb   : > { %v922_v60 = vsel %vm921_vm1, %v917_v24, %v920_v14 }
  0xec   : > { %928 = vst.msk [vmem:[%s449_s22] sm:$0x3] %vm926_vm2, %v922_v60 }
  0xed   : > { %1257 = shalt.err (!%p1254_p8)
}
  0xee   : > { %1110 = dma.vmem_to_hbm [thread:$0]  (%p1400_p5), %s943_s12, 32, %s945_s26, %s930_s17  }
  0xef PF: > { %p1127_p9 = scmp.ge.s32.totalorder %s1300_s16, 2  ;;  %s956_s29 = sand.u32 1, %s1288_s13  }
  0xf0   : > { %s957_s21 = scalar_lea.sflag [#allocation4], %s956_s29 }
  0xf1   : > { %p1120_p10 = pnand %p1127_p9, %p1404_p6 }
  0xf3   : > { %p1121_p11 = pneg %p1120_p10 }
  0xf5   : > { %1283 = dma.done.wait (%p1121_p11), %s957_s21, 32  }
  0xf6   : > { %1285 = vsyncadd (%p1121_p11), %s957_s21, 4294967264  ;;  %s1649_s22 = sld [smem:[#allocation11_spill]]  ;;  %p22_p12 = scmp.ge.s32.totalorder %s1387_s19, 4  }
  0xf7   : > { %s1650_s13 = smov %s1292_s14  ;;  %s1651_s14 = smov %s1296_s15 }
  0xf8   : > { %s1653_s16 = smov %s1387_s19  ;;  %24 = sbr.rel (!%p22_p12) target bundleno = 5 (0x5), region = 125 }
  0xfc   : > { %s1652_s15 = smov %s1649_s22 }
  0xfd   :  { %963 = vsyncpa [#allocation3], 1 }
  0xfe   :  { %965 = vsyncpa [#allocation3 + $0x1], 1 }
  0xff   :  { %966 = vsyncpa [#allocation6], 1 }
 0x100   :  { %967 = vsyncpa [#allocation4], 1 }
 0x101   :  { %969 = vsyncpa [#allocation4 + $0x1], 1 }

</bundles_post_ra>
